<compile_context>
chip_gen: v7x
topology: tpu7x:2x2x1
jax: 0.10.0
libtpu: 0.0.40
codegen_flags: <defaults>
</compile_context>

<pallas_src>
import functools
import math

import jax
import jax.numpy as jnp
from jax import lax
from jax.experimental import pallas as pl
from jax.experimental.pallas import tpu as pltpu

DIM = 32
NUM_HEADS = 2
N_Q = 8
N_K = 8
BATCH = 2
LN_EPS = 1e-5
NEG_MASK = -1e30   # additive bias for cross-batch score positions


def _erf(x):
    # Abramowitz & Stegun 7.1.26 rational approximation (|err| < 1.5e-7);
    # uses only exp/abs/mul so it lowers cleanly in Mosaic. Matches torch's
    # exact-erf GELU to float32 tolerance (not bit-exact).
    a1, a2, a3, a4, a5 = (0.254829592, -0.284496736, 1.421413741,
                          -1.453152027, 1.061405429)
    p = 0.3275911
    sgn = jnp.where(x >= 0.0, 1.0, -1.0)
    ax = jnp.abs(x)
    t = 1.0 / (1.0 + p * ax)
    poly = ((((a5 * t + a4) * t + a3) * t + a2) * t + a1) * t
    return sgn * (1.0 - poly * jnp.exp(-ax * ax))


def _gelu_exact(x):
    return 0.5 * x * (1.0 + _erf(x * (1.0 / math.sqrt(2.0))))


def _layernorm(x, w, b):
    # Single-pass: E[x] and E[x^2] reductions are independent so the two
    # cross-lane reductions overlap in the XLU instead of serializing.
    mu = jnp.mean(x, axis=-1, keepdims=True)
    msq = jnp.mean(x * x, axis=-1, keepdims=True)
    var = msq - mu * mu
    return (x - mu) * lax.rsqrt(var + LN_EPS) * w + b


def decode_kernel(act_ref, mask_ref, vec_ref, w_ref, out_ref, *,
                  m_rows, k_rows, dim, hidden, num_heads):
    C, Hd, H, M, K = dim, hidden, num_heads, m_rows, k_rows

    act = act_ref[...]                               # (M+K, C): dec rows || enc rows

    # packed (1, ·) parameter rows
    n1w = vec_ref[0:1, 0:C]
    n1b = vec_ref[1:2, 0:C]
    n2w = vec_ref[2:3, 0:C]
    n2b = vec_ref[3:4, 0:C]
    bp = vec_ref[4:5, 0:C]
    b1 = vec_ref[5:6, 0:Hd]
    b2 = vec_ref[6:7, 0:C]

    # shared c_norm1 applied ONCE to the concatenated dec||enc slab
    xn = _layernorm(act, n1w, n1b)
    dec_n = xn[0:M, :]
    enc_n = xn[M:M + K, :]

    # full-width projections (weights packed row-wise in w_ref)
    wq = w_ref[0:C, 0:C]
    wk = w_ref[C:2 * C, 0:C]
    wv = w_ref[2 * C:3 * C, 0:C]
    q = jnp.dot(dec_n, wq, preferred_element_type=jnp.float32)    # (M, C)
    k = jnp.dot(enc_n, wk, preferred_element_type=jnp.float32)    # (K, C)
    v = jnp.dot(enc_n, wv, preferred_element_type=jnp.float32)    # (K, C)

    # Row-stacked head-masked q: lane-masking q is equivalent to slicing out
    # the head columns because the contraction below runs over all C lanes.
    qm = jnp.concatenate(
        [q * vec_ref[7 + h:8 + h, 0:C] for h in range(H)], axis=0)  # (H*M, C)

    # All heads' scores in ONE contraction (no explicit transpose of k).
    s = lax.dot_general(qm, k, (((1,), (1,)), ((), ())),
                        preferred_element_type=jnp.float32)         # (H*M, K)

    # masked logits: scale is folded into mask plane 0 in the wrapper;
    # off-block positions get -1e30 so exp underflows to exactly 0 and the
    # row max / denominator match the per-batch reference computation.
    a = s * mask_ref[0] + mask_ref[1]
    mx = jnp.max(a, axis=-1, keepdims=True)
    e = jnp.exp(a - mx)
    p = e * pl.reciprocal(jnp.sum(e, axis=-1, keepdims=True), approx=False)
    attn = jnp.where(a != 0.0, p, 0.0)   # off-block entries: p == 0 anyway

    # one full-width attn @ v for all heads (rows h*M:(h+1)*M belong to head h)
    av = jnp.dot(attn, v, preferred_element_type=jnp.float32)       # (H*M, C)

    # residual + proj bias; per-head projection via row-masked Wp (no concat)
    x = act[0:M, :] + bp
    for h in range(H):
        wp_h = w_ref[(3 + h) * C:(4 + h) * C, 0:C]
        x = x + jnp.dot(av[h * M:(h + 1) * M, :], wp_h,
                        preferred_element_type=jnp.float32)

    # c_norm2 + c_mlp (fc1 -> exact GELU -> fc2); dropout p=0.0 is identity
    w1 = w_ref[(3 + H) * C:(4 + H) * C, 0:Hd]
    w2 = w_ref[(4 + H) * C:(4 + H) * C + Hd, 0:C]
    xn2 = _layernorm(x, n2w, n2b)
    h1 = jnp.dot(xn2, w1, preferred_element_type=jnp.float32) + b1
    h1 = _gelu_exact(h1)
    out = jnp.dot(h1, w2, preferred_element_type=jnp.float32) + b2

    out_ref[...] = out.astype(out_ref.dtype)


def decode_forward(dec, enc, trans_mat, params, *, num_heads=NUM_HEADS):
    B, Nq, C = dec.shape
    _, Nk, _ = enc.shape
    hd = C // num_heads
    Hd = params["w1"].shape[1]
    Vmax = max(C, Hd)
    M = B * Nq
    K = B * Nk
    scale = float(hd) ** -0.5
    f32 = jnp.float32

    # ---- wrapper-side layout plumbing (tiny XLA ops, outside the kernel) ----
    # 1) activation slab: dec rows then enc rows
    act = jnp.concatenate([dec.reshape(M, C), enc.reshape(K, C)],
                          axis=0).astype(f32)                      # (M+K, C)

    # 2) mask slab: scaled block-diagonal connectivity + off-block bias,
    #    tiled per head so the kernel applies them to the stacked score matrix
    tm_full = jnp.zeros((M, K), f32)
    blk = jnp.zeros((M, K), jnp.bool_)
    for b in range(B):
        tm_full = tm_full.at[b * Nq:(b + 1) * Nq,
                             b * Nk:(b + 1) * Nk].set(trans_mat[b].astype(f32))
        blk = blk.at[b * Nq:(b + 1) * Nq, b * Nk:(b + 1) * Nk].set(True)
    tm_scaled = scale * tm_full
    neg = jnp.where(blk, 0.0, NEG_MASK).astype(f32)
    masks = jnp.stack([jnp.tile(tm_scaled, (num_heads, 1)),
                       jnp.tile(neg, (num_heads, 1))], axis=0)     # (2, H*M, K)

    # 3) vector-parameter slab: LN affines, biases, per-head lane masks
    def row(vv):
        vv = jnp.asarray(vv, f32).reshape(1, -1)
        return jnp.pad(vv, ((0, 0), (0, Vmax - vv.shape[1])))

    head_rows = []
    for h in range(num_heads):
        hm = jnp.zeros((1, C), f32).at[0, h * hd:(h + 1) * hd].set(1.0)
        head_rows.append(row(hm))
    vec = jnp.concatenate(
        [row(params["n1_w"]), row(params["n1_b"]),
         row(params["n2_w"]), row(params["n2_b"]),
         row(params["bp"]), row(params["b1"]), row(params["b2"])] + head_rows,
        axis=0)                                                    # (7+H, Vmax)

    # 4) weight slab: Wq | Wk | Wv | row-masked Wp per head | fc1 | fc2
    def cols(w):
        w = jnp.asarray(w, f32)
        return jnp.pad(w, ((0, 0), (0, Vmax - w.shape[1])))

    wp = jnp.asarray(params["wp"], f32)
    wp_masked = []
    for h in range(num_heads):
        rm = jnp.zeros((C, 1), f32).at[h * hd:(h + 1) * hd, 0].set(1.0)
        wp_masked.append(cols(wp * rm))
    wslab = jnp.concatenate(
        [cols(params["wq"]), cols(params["wk"]), cols(params["wv"])]
        + wp_masked + [cols(params["w1"]), cols(params["w2"])],
        axis=0)                                        # ((4+H)*C + Hd, Vmax)

    def full(shape):
        return pl.BlockSpec(tuple(shape), lambda i, _n=len(shape): (0,) * _n)

    kernel = functools.partial(decode_kernel, m_rows=M, k_rows=K, dim=C,
                               hidden=Hd, num_heads=num_heads)
    out = pl.pallas_call(
        kernel,
        out_shape=jax.ShapeDtypeStruct((M, C), f32),
        grid_spec=pltpu.PrefetchScalarGridSpec(
            num_scalar_prefetch=0,
            grid=(1,),                       # single step: overhead paid once
            in_specs=[full(act.shape), full(masks.shape),
                      full(vec.shape), full(wslab.shape)],
            out_specs=full((M, C)),
        ),
        compiler_params=pltpu.CompilerParams(
            dimension_semantics=("arbitrary",)),
    )(act, masks, vec, wslab)
    return out.reshape(B, Nq, C)


def init_params(key, dim, hidden):
    ks = jax.random.split(key, 8)
    s = 0.1
    return {
        # LayerNorm affine params (perturbed so the affine path is exercised)
        "n1_w": 1.0 + s * jax.random.normal(ks[0], (1, dim), jnp.float32),
        "n1_b": s * jax.random.normal(ks[1], (1, dim), jnp.float32),
        "n2_w": 1.0 + s * jax.random.normal(ks[2], (1, dim), jnp.float32),
        "n2_b": s * jax.random.normal(ks[3], (1, dim), jnp.float32),
        # Linear weights pre-transposed to (in, out); q/k/v have no bias.
        "wq": s * jax.random.normal(ks[4], (dim, dim), jnp.float32),
        "wk": s * jax.random.normal(ks[5], (dim, dim), jnp.float32),
        "wv": s * jax.random.normal(ks[6], (dim, dim), jnp.float32),
        "wp": s * jax.random.normal(ks[7], (dim, dim), jnp.float32),
        "bp": jnp.zeros((1, dim), jnp.float32) + 0.01,
        "w1": s * jax.random.normal(jax.random.fold_in(key, 100),
                                    (dim, hidden), jnp.float32),
        "b1": jnp.zeros((1, hidden), jnp.float32) + 0.02,
        "w2": s * jax.random.normal(jax.random.fold_in(key, 101),
                                    (hidden, dim), jnp.float32),
        "b2": jnp.zeros((1, dim), jnp.float32) - 0.01,
    }


if __name__ == "__main__":
    key = jax.random.PRNGKey(0)
    k_dec, k_enc, k_tm, k_par = jax.random.split(key, 4)

    dec_inputs = jax.random.normal(k_dec, (BATCH, N_Q, DIM), jnp.float32)
    enc_outputs = jax.random.normal(k_enc, (BATCH, N_K, DIM), jnp.float32)
    # binary connectivity matrix (contains genuine zeros so the
    # where(attn != 0, softmax, 0) path is exercised)
    trans_mat = jax.random.bernoulli(k_tm, 0.6, (BATCH, N_Q, N_K)).astype(
        jnp.float32)

    params = init_params(k_par, DIM, DIM)  # mlp_ratio = 1 -> hidden == dim

    out = decode_forward(dec_inputs, enc_outputs, trans_mat, params,
                         num_heads=NUM_HEADS)
    jax.block_until_ready(out)
    assert out.shape == (BATCH, N_Q, DIM)
    print("KERNEL_OK")
</pallas_src>

<mosaic_0001>
module attributes {stable_mosaic.version = 11 : i64} {
  func.func @decode_kernel(%arg0: i32, %arg1: memref<32x32xf32, #tpu.memory_space<vmem>>, %arg2: memref<2x32x16xf32, #tpu.memory_space<vmem>>, %arg3: memref<9x32xf32, #tpu.memory_space<vmem>>, %arg4: memref<224x32xf32, #tpu.memory_space<vmem>>, %arg5: memref<16x32xf32, #tpu.memory_space<vmem>>) attributes {dimension_semantics = [#tpu.dimension_semantics<arbitrary>], iteration_bounds = array<i64: 1>, scalar_prefetch = 0 : i64, scratch_operands = 0 : i64, tpu.core_type = #tpu.core_type<tc>, window_params = [{pipeline_mode = #tpu.pipeline_mode<synchronous>, transform_indices = @transform_0, window_bounds = array<i64: 32, 32>}, {pipeline_mode = #tpu.pipeline_mode<synchronous>, transform_indices = @transform_1, window_bounds = array<i64: 2, 32, 16>}, {pipeline_mode = #tpu.pipeline_mode<synchronous>, transform_indices = @transform_2, window_bounds = array<i64: 9, 32>}, {pipeline_mode = #tpu.pipeline_mode<synchronous>, transform_indices = @transform_3, window_bounds = array<i64: 224, 32>}, {pipeline_mode = #tpu.pipeline_mode<synchronous>, transform_indices = @transform_4, window_bounds = array<i64: 16, 32>}]} {
    %c0 = arith.constant 0 : index
    %c0_0 = arith.constant 0 : index
    %0 = vector.load %arg1[%c0, %c0_0] : memref<32x32xf32, #tpu.memory_space<vmem>>, vector<32x32xf32>
    %c0_1 = arith.constant 0 : index
    %c0_2 = arith.constant 0 : index
    %1 = vector.load %arg3[%c0_1, %c0_2] : memref<9x32xf32, #tpu.memory_space<vmem>>, vector<1x32xf32>
    %c1 = arith.constant 1 : index
    %c0_3 = arith.constant 0 : index
    %2 = vector.load %arg3[%c1, %c0_3] : memref<9x32xf32, #tpu.memory_space<vmem>>, vector<1x32xf32>
    %c2 = arith.constant 2 : index
    %c0_4 = arith.constant 0 : index
    %3 = vector.load %arg3[%c2, %c0_4] : memref<9x32xf32, #tpu.memory_space<vmem>>, vector<1x32xf32>
    %c3 = arith.constant 3 : index
    %c0_5 = arith.constant 0 : index
    %4 = vector.load %arg3[%c3, %c0_5] : memref<9x32xf32, #tpu.memory_space<vmem>>, vector<1x32xf32>
    %c4 = arith.constant 4 : index
    %c0_6 = arith.constant 0 : index
    %5 = vector.load %arg3[%c4, %c0_6] : memref<9x32xf32, #tpu.memory_space<vmem>>, vector<1x32xf32>
    %c5 = arith.constant 5 : index
    %c0_7 = arith.constant 0 : index
    %6 = vector.load %arg3[%c5, %c0_7] : memref<9x32xf32, #tpu.memory_space<vmem>>, vector<1x32xf32>
    %c6 = arith.constant 6 : index
    %c0_8 = arith.constant 0 : index
    %7 = vector.load %arg3[%c6, %c0_8] : memref<9x32xf32, #tpu.memory_space<vmem>>, vector<1x32xf32>
    %cst = arith.constant dense<0.000000e+00> : vector<32xf32>
    %8 = vector.multi_reduction <add>, %0, %cst [1] : vector<32x32xf32> to vector<32xf32>
    %9 = vector.shape_cast %8 : vector<32xf32> to vector<32x1xf32>
    %cst_9 = arith.constant 3.200000e+01 : f32
    %10 = vector.broadcast %cst_9 : f32 to vector<32x1xf32>
    %11 = arith.divf %9, %10 : vector<32x1xf32>
    %12 = arith.mulf %0, %0 : vector<32x32xf32>
    %cst_10 = arith.constant dense<0.000000e+00> : vector<32xf32>
    %13 = vector.multi_reduction <add>, %12, %cst_10 [1] : vector<32x32xf32> to vector<32xf32>
    %14 = vector.shape_cast %13 : vector<32xf32> to vector<32x1xf32>
    %cst_11 = arith.constant 3.200000e+01 : f32
    %15 = vector.broadcast %cst_11 : f32 to vector<32x1xf32>
    %16 = arith.divf %14, %15 : vector<32x1xf32>
    %17 = arith.mulf %11, %11 : vector<32x1xf32>
    %18 = arith.subf %16, %17 : vector<32x1xf32>
    %19 = vector.broadcast %11 : vector<32x1xf32> to vector<32x32xf32>
    %20 = arith.subf %0, %19 : vector<32x32xf32>
    %cst_12 = arith.constant 9.99999974E-6 : f32
    %21 = vector.broadcast %cst_12 : f32 to vector<32x1xf32>
    %22 = arith.addf %18, %21 : vector<32x1xf32>
    %23 = math.rsqrt %22 : vector<32x1xf32>
    %24 = vector.broadcast %23 : vector<32x1xf32> to vector<32x32xf32>
    %25 = arith.mulf %20, %24 : vector<32x32xf32>
    %26 = vector.broadcast %1 : vector<1x32xf32> to vector<32x32xf32>
    %27 = arith.mulf %25, %26 : vector<32x32xf32>
    %28 = vector.broadcast %2 : vector<1x32xf32> to vector<32x32xf32>
    %29 = arith.addf %27, %28 : vector<32x32xf32>
    %30 = vector.extract_strided_slice %29 {offsets = [0, 0], sizes = [16, 32], strides = [1, 1]} : vector<32x32xf32> to vector<16x32xf32>
    %31 = vector.extract_strided_slice %29 {offsets = [16, 0], sizes = [16, 32], strides = [1, 1]} : vector<32x32xf32> to vector<16x32xf32>
    %c0_13 = arith.constant 0 : index
    %c0_14 = arith.constant 0 : index
    %32 = vector.load %arg4[%c0_13, %c0_14] : memref<224x32xf32, #tpu.memory_space<vmem>>, vector<32x32xf32>
    %c32 = arith.constant 32 : index
    %c0_15 = arith.constant 0 : index
    %33 = vector.load %arg4[%c32, %c0_15] : memref<224x32xf32, #tpu.memory_space<vmem>>, vector<32x32xf32>
    %c64 = arith.constant 64 : index
    %c0_16 = arith.constant 0 : index
    %34 = vector.load %arg4[%c64, %c0_16] : memref<224x32xf32, #tpu.memory_space<vmem>>, vector<32x32xf32>
    %cst_17 = arith.constant dense<0.000000e+00> : vector<16x32xf32>
    %35 = tpu.matmul %30, %32, %cst_17 {dimension_numbers = #tpu.dot_dimension_numbers<[1], [0], [0], [1], [0, 0, 1, 1], [], []>} : vector<16x32xf32>, vector<32x32xf32>, vector<16x32xf32> -> vector<16x32xf32>
    %cst_18 = arith.constant dense<0.000000e+00> : vector<16x32xf32>
    %36 = tpu.matmul %31, %33, %cst_18 {dimension_numbers = #tpu.dot_dimension_numbers<[1], [0], [0], [1], [0, 0, 1, 1], [], []>} : vector<16x32xf32>, vector<32x32xf32>, vector<16x32xf32> -> vector<16x32xf32>
    %cst_19 = arith.constant dense<0.000000e+00> : vector<16x32xf32>
    %37 = tpu.matmul %31, %34, %cst_19 {dimension_numbers = #tpu.dot_dimension_numbers<[1], [0], [0], [1], [0, 0, 1, 1], [], []>} : vector<16x32xf32>, vector<32x32xf32>, vector<16x32xf32> -> vector<16x32xf32>
    %c7 = arith.constant 7 : index
    %c0_20 = arith.constant 0 : index
    %38 = vector.load %arg3[%c7, %c0_20] : memref<9x32xf32, #tpu.memory_space<vmem>>, vector<1x32xf32>
    %39 = vector.broadcast %38 : vector<1x32xf32> to vector<16x32xf32>
    %40 = arith.mulf %35, %39 : vector<16x32xf32>
    %c8 = arith.constant 8 : index
    %c0_21 = arith.constant 0 : index
    %41 = vector.load %arg3[%c8, %c0_21] : memref<9x32xf32, #tpu.memory_space<vmem>>, vector<1x32xf32>
    %42 = vector.broadcast %41 : vector<1x32xf32> to vector<16x32xf32>
    %43 = arith.mulf %35, %42 : vector<16x32xf32>
    %44 = tpu.concatenate %40, %43 in 0 : vector<16x32xf32>, vector<16x32xf32> -> vector<32x32xf32>
    %cst_22 = arith.constant dense<0.000000e+00> : vector<32x16xf32>
    %45 = tpu.matmul %44, %36, %cst_22 {dimension_numbers = #tpu.dot_dimension_numbers<[1], [1], [0], [0], [0, 0, 1, 0], [], []>} : vector<32x32xf32>, vector<16x32xf32>, vector<32x16xf32> -> vector<32x16xf32>
    %c0_23 = arith.constant 0 : index
    %c0_24 = arith.constant 0 : index
    %c0_25 = arith.constant 0 : index
    %46 = vector.load %arg2[%c0_23, %c0_24, %c0_25] : memref<2x32x16xf32, #tpu.memory_space<vmem>>, vector<1x32x16xf32>
    %47 = vector.shape_cast %46 : vector<1x32x16xf32> to vector<32x16xf32>
    %48 = arith.mulf %45, %47 : vector<32x16xf32>
    %c1_26 = arith.constant 1 : index
    %c0_27 = arith.constant 0 : index
    %c0_28 = arith.constant 0 : index
    %49 = vector.load %arg2[%c1_26, %c0_27, %c0_28] : memref<2x32x16xf32, #tpu.memory_space<vmem>>, vector<1x32x16xf32>
    %50 = vector.shape_cast %49 : vector<1x32x16xf32> to vector<32x16xf32>
    %51 = arith.addf %48, %50 : vector<32x16xf32>
    %cst_29 = arith.constant dense<0xFF800000> : vector<32xf32>
    %52 = vector.multi_reduction <maximumf>, %51, %cst_29 [1] : vector<32x16xf32> to vector<32xf32>
    %53 = vector.shape_cast %52 : vector<32xf32> to vector<32x1xf32>
    %54 = vector.broadcast %53 : vector<32x1xf32> to vector<32x16xf32>
    %55 = arith.subf %51, %54 : vector<32x16xf32>
    %56 = math.exp %55 : vector<32x16xf32>
    %cst_30 = arith.constant dense<0.000000e+00> : vector<32xf32>
    %57 = vector.multi_reduction <add>, %56, %cst_30 [1] : vector<32x16xf32> to vector<32xf32>
    %58 = vector.shape_cast %57 : vector<32xf32> to vector<32x1xf32>
    %59 = tpu.reciprocal %58 : vector<32x1xf32> -> vector<32x1xf32>
    %60 = vector.broadcast %59 : vector<32x1xf32> to vector<32x16xf32>
    %61 = arith.mulf %56, %60 : vector<32x16xf32>
    %cst_31 = arith.constant 0.000000e+00 : f32
    %62 = vector.broadcast %cst_31 : f32 to vector<32x16xf32>
    %63 = arith.cmpf one, %51, %62 : vector<32x16xf32>
    %cst_32 = arith.constant 0.000000e+00 : f32
    %64 = vector.broadcast %cst_32 : f32 to vector<32x16xf32>
    %65 = arith.select %63, %61, %64 : vector<32x16xi1>, vector<32x16xf32>
    %cst_33 = arith.constant dense<0.000000e+00> : vector<32x32xf32>
    %66 = tpu.matmul %65, %37, %cst_33 {dimension_numbers = #tpu.dot_dimension_numbers<[1], [0], [0], [1], [0, 0, 1, 1], [], []>} : vector<32x16xf32>, vector<16x32xf32>, vector<32x32xf32> -> vector<32x32xf32>
    %67 = vector.extract_strided_slice %0 {offsets = [0, 0], sizes = [16, 32], strides = [1, 1]} : vector<32x32xf32> to vector<16x32xf32>
    %68 = vector.broadcast %5 : vector<1x32xf32> to vector<16x32xf32>
    %69 = arith.addf %67, %68 : vector<16x32xf32>
    %c96 = arith.constant 96 : index
    %c0_34 = arith.constant 0 : index
    %70 = vector.load %arg4[%c96, %c0_34] : memref<224x32xf32, #tpu.memory_space<vmem>>, vector<32x32xf32>
    %71 = vector.extract_strided_slice %66 {offsets = [0, 0], sizes = [16, 32], strides = [1, 1]} : vector<32x32xf32> to vector<16x32xf32>
    %cst_35 = arith.constant dense<0.000000e+00> : vector<16x32xf32>
    %72 = tpu.matmul %71, %70, %cst_35 {dimension_numbers = #tpu.dot_dimension_numbers<[1], [0], [0], [1], [0, 0, 1, 1], [], []>} : vector<16x32xf32>, vector<32x32xf32>, vector<16x32xf32> -> vector<16x32xf32>
    %73 = arith.addf %69, %72 : vector<16x32xf32>
    %c128 = arith.constant 128 : index
    %c0_36 = arith.constant 0 : index
    %74 = vector.load %arg4[%c128, %c0_36] : memref<224x32xf32, #tpu.memory_space<vmem>>, vector<32x32xf32>
    %75 = vector.extract_strided_slice %66 {offsets = [16, 0], sizes = [16, 32], strides = [1, 1]} : vector<32x32xf32> to vector<16x32xf32>
    %cst_37 = arith.constant dense<0.000000e+00> : vector<16x32xf32>
    %76 = tpu.matmul %75, %74, %cst_37 {dimension_numbers = #tpu.dot_dimension_numbers<[1], [0], [0], [1], [0, 0, 1, 1], [], []>} : vector<16x32xf32>, vector<32x32xf32>, vector<16x32xf32> -> vector<16x32xf32>
    %77 = arith.addf %73, %76 : vector<16x32xf32>
    %c160 = arith.constant 160 : index
    %c0_38 = arith.constant 0 : index
    %78 = vector.load %arg4[%c160, %c0_38] : memref<224x32xf32, #tpu.memory_space<vmem>>, vector<32x32xf32>
    %c192 = arith.constant 192 : index
    %c0_39 = arith.constant 0 : index
    %79 = vector.load %arg4[%c192, %c0_39] : memref<224x32xf32, #tpu.memory_space<vmem>>, vector<32x32xf32>
    %cst_40 = arith.constant dense<0.000000e+00> : vector<16xf32>
    %80 = vector.multi_reduction <add>, %77, %cst_40 [1] : vector<16x32xf32> to vector<16xf32>
    %81 = vector.shape_cast %80 : vector<16xf32> to vector<16x1xf32>
    %cst_41 = arith.constant 3.200000e+01 : f32
    %82 = vector.broadcast %cst_41 : f32 to vector<16x1xf32>
    %83 = arith.divf %81, %82 : vector<16x1xf32>
    %84 = arith.mulf %77, %77 : vector<16x32xf32>
    %cst_42 = arith.constant dense<0.000000e+00> : vector<16xf32>
    %85 = vector.multi_reduction <add>, %84, %cst_42 [1] : vector<16x32xf32> to vector<16xf32>
    %86 = vector.shape_cast %85 : vector<16xf32> to vector<16x1xf32>
    %cst_43 = arith.constant 3.200000e+01 : f32
    %87 = vector.broadcast %cst_43 : f32 to vector<16x1xf32>
    %88 = arith.divf %86, %87 : vector<16x1xf32>
    %89 = arith.mulf %83, %83 : vector<16x1xf32>
    %90 = arith.subf %88, %89 : vector<16x1xf32>
    %91 = vector.broadcast %83 : vector<16x1xf32> to vector<16x32xf32>
    %92 = arith.subf %77, %91 : vector<16x32xf32>
    %cst_44 = arith.constant 9.99999974E-6 : f32
    %93 = vector.broadcast %cst_44 : f32 to vector<16x1xf32>
    %94 = arith.addf %90, %93 : vector<16x1xf32>
    %95 = math.rsqrt %94 : vector<16x1xf32>
    %96 = vector.broadcast %95 : vector<16x1xf32> to vector<16x32xf32>
    %97 = arith.mulf %92, %96 : vector<16x32xf32>
    %98 = vector.broadcast %3 : vector<1x32xf32> to vector<16x32xf32>
    %99 = arith.mulf %97, %98 : vector<16x32xf32>
    %100 = vector.broadcast %4 : vector<1x32xf32> to vector<16x32xf32>
    %101 = arith.addf %99, %100 : vector<16x32xf32>
    %cst_45 = arith.constant dense<0.000000e+00> : vector<16x32xf32>
    %102 = tpu.matmul %101, %78, %cst_45 {dimension_numbers = #tpu.dot_dimension_numbers<[1], [0], [0], [1], [0, 0, 1, 1], [], []>} : vector<16x32xf32>, vector<32x32xf32>, vector<16x32xf32> -> vector<16x32xf32>
    %103 = vector.broadcast %6 : vector<1x32xf32> to vector<16x32xf32>
    %104 = arith.addf %102, %103 : vector<16x32xf32>
    %cst_46 = arith.constant 5.000000e-01 : f32
    %105 = vector.broadcast %cst_46 : f32 to vector<16x32xf32>
    %106 = arith.mulf %105, %104 : vector<16x32xf32>
    %cst_47 = arith.constant 0.707106769 : f32
    %107 = vector.broadcast %cst_47 : f32 to vector<16x32xf32>
    %108 = arith.mulf %104, %107 : vector<16x32xf32>
    %cst_48 = arith.constant 0.000000e+00 : f32
    %109 = vector.broadcast %cst_48 : f32 to vector<16x32xf32>
    %110 = arith.cmpf oge, %108, %109 : vector<16x32xf32>
    %cst_49 = arith.constant 1.000000e+00 : f32
    %cst_50 = arith.constant -1.000000e+00 : f32
    %111 = vector.broadcast %cst_49 : f32 to vector<16x32xf32>
    %112 = vector.broadcast %cst_50 : f32 to vector<16x32xf32>
    %113 = arith.select %110, %111, %112 : vector<16x32xi1>, vector<16x32xf32>
    %114 = math.absf %108 : vector<16x32xf32>
    %cst_51 = arith.constant 0.327591091 : f32
    %115 = vector.broadcast %cst_51 : f32 to vector<16x32xf32>
    %116 = arith.mulf %115, %114 : vector<16x32xf32>
    %cst_52 = arith.constant 1.000000e+00 : f32
    %117 = vector.broadcast %cst_52 : f32 to vector<16x32xf32>
    %118 = arith.addf %117, %116 : vector<16x32xf32>
    %cst_53 = arith.constant 1.000000e+00 : f32
    %119 = vector.broadcast %cst_53 : f32 to vector<16x32xf32>
    %120 = arith.divf %119, %118 : vector<16x32xf32>
    %cst_54 = arith.constant 1.06140542 : f32
    %121 = vector.broadcast %cst_54 : f32 to vector<16x32xf32>
    %122 = arith.mulf %121, %120 : vector<16x32xf32>
    %cst_55 = arith.constant -1.45315206 : f32
    %123 = vector.broadcast %cst_55 : f32 to vector<16x32xf32>
    %124 = arith.addf %122, %123 : vector<16x32xf32>
    %125 = arith.mulf %124, %120 : vector<16x32xf32>
    %cst_56 = arith.constant 1.42141378 : f32
    %126 = vector.broadcast %cst_56 : f32 to vector<16x32xf32>
    %127 = arith.addf %125, %126 : vector<16x32xf32>
    %128 = arith.mulf %127, %120 : vector<16x32xf32>
    %cst_57 = arith.constant -0.284496725 : f32
    %129 = vector.broadcast %cst_57 : f32 to vector<16x32xf32>
    %130 = arith.addf %128, %129 : vector<16x32xf32>
    %131 = arith.mulf %130, %120 : vector<16x32xf32>
    %cst_58 = arith.constant 0.254829586 : f32
    %132 = vector.broadcast %cst_58 : f32 to vector<16x32xf32>
    %133 = arith.addf %131, %132 : vector<16x32xf32>
    %134 = arith.mulf %133, %120 : vector<16x32xf32>
    %cst_59 = arith.constant 0.000000e+00 : f32
    %135 = vector.broadcast %cst_59 : f32 to vector<16x32xf32>
    %136 = arith.subf %135, %114 : vector<16x32xf32>
    %137 = arith.mulf %136, %114 : vector<16x32xf32>
    %138 = math.exp %137 : vector<16x32xf32>
    %139 = arith.mulf %134, %138 : vector<16x32xf32>
    %cst_60 = arith.constant 1.000000e+00 : f32
    %140 = vector.broadcast %cst_60 : f32 to vector<16x32xf32>
    %141 = arith.subf %140, %139 : vector<16x32xf32>
    %142 = arith.mulf %113, %141 : vector<16x32xf32>
    %cst_61 = arith.constant 1.000000e+00 : f32
    %143 = vector.broadcast %cst_61 : f32 to vector<16x32xf32>
    %144 = arith.addf %143, %142 : vector<16x32xf32>
    %145 = arith.mulf %106, %144 : vector<16x32xf32>
    %cst_62 = arith.constant dense<0.000000e+00> : vector<16x32xf32>
    %146 = tpu.matmul %145, %79, %cst_62 {dimension_numbers = #tpu.dot_dimension_numbers<[1], [0], [0], [1], [0, 0, 1, 1], [], []>} : vector<16x32xf32>, vector<32x32xf32>, vector<16x32xf32> -> vector<16x32xf32>
    %147 = vector.broadcast %7 : vector<1x32xf32> to vector<16x32xf32>
    %148 = arith.addf %146, %147 : vector<16x32xf32>
    %c0_63 = arith.constant 0 : index
    %c0_64 = arith.constant 0 : index
    %149 = vector.load %arg5[%c0_63, %c0_64] : memref<16x32xf32, #tpu.memory_space<vmem>>, vector<16x32xf32>
    tpu.vector_store %arg5[%c0_63, %c0_64], %148 {strides = array<i32>} : memref<16x32xf32, #tpu.memory_space<vmem>>, vector<16x32xf32>,
    return
  }
  func.func @transform_0(%arg0: i32) -> (i32, i32) {
    %c0_i32 = arith.constant 0 : i32
    %c0_i32_0 = arith.constant 0 : i32
    %c0_i32_1 = arith.constant 0 : i32
    return %c0_i32, %c0_i32_0 : i32, i32
  }
  func.func @transform_1(%arg0: i32) -> (i32, i32, i32) {
    %c0_i32 = arith.constant 0 : i32
    %c0_i32_0 = arith.constant 0 : i32
    %c0_i32_1 = arith.constant 0 : i32
    %c0_i32_2 = arith.constant 0 : i32
    return %c0_i32, %c0_i32_0, %c0_i32_1 : i32, i32, i32
  }
  func.func @transform_2(%arg0: i32) -> (i32, i32) {
    %c0_i32 = arith.constant 0 : i32
    %c0_i32_0 = arith.constant 0 : i32
    %c0_i32_1 = arith.constant 0 : i32
    return %c0_i32, %c0_i32_0 : i32, i32
  }
  func.func @transform_3(%arg0: i32) -> (i32, i32) {
    %c0_i32 = arith.constant 0 : i32
    %c0_i32_0 = arith.constant 0 : i32
    %c0_i32_1 = arith.constant 0 : i32
    return %c0_i32, %c0_i32_0 : i32, i32
  }
  func.func @transform_4(%arg0: i32) -> (i32, i32) {
    %c0_i32 = arith.constant 0 : i32
    %c0_i32_0 = arith.constant 0 : i32
    %c0_i32_1 = arith.constant 0 : i32
    return %c0_i32, %c0_i32_0 : i32, i32
  }
}

</mosaic_0001>

<bundles_post_ra>
// kernel: tpu_custom_call.1
= control target key start
LH: loop header
LB: loop body
LE: loop exit
PB: predicated region body
PF: predicated region fallthrough
CT: control target
= control target key end

     0   :  { %vm29_vm0 = vcmask 261120   ;;  %s1718_s0 = inlined_call_operand.vmem [shape: f32[32,32], index: 0, kind: input, shape index: {}]   ;;  %s1719_s1 = inlined_call_operand.vmem [shape: f32[2,32,16], index: 1, kind: input, shape index: {}]   ;;  %s1720_s2 = inlined_call_operand.vmem [shape: f32[9,32], index: 2, kind: input, shape index: {}]   ;;  %s1721_s3 = inlined_call_operand.vmem [shape: f32[224,32], index: 3, kind: input, shape index: {}]   ;;  %s1722_s4 = inlined_call_operand.hbm [shape: f32[16,32], index: 4, kind: output, shape index: {}]  }
   0x1   :  { %v1466_v0 = vld [vmem:[%s1718_s0 + $0x10] sm:$0xff]  ;;  %v1471_v1 = vld [vmem:[%s1718_s0 + $0x18] sm:$0xff] }
   0x2   :  { %v36_v2 = vsel %vm29_vm0, %v1466_v0, 0.0  ;;  %v49_v3 = vmul.f32 %v1466_v0, %v1466_v0  ;;  %v50_v4 = vmul.f32 %v1471_v1, %v1471_v1 }
   0x3   :  { %9 = vsyncpa [#allocation3], 0  ;;  %37 = vadd.xlane.f32.xlu0 %v36_v2  ;;  %v39_v6 = vsel %vm29_vm0, %v1471_v1, 0.0  ;;  %v1485_v7 = vld [vmem:[%s1718_s0] sm:$0xff]  ;;  %v1491_v9 = vld [vmem:[%s1718_s0 + $0x8] sm:$0xff]  ;;  %vm490_vm2 = vcmask 130048  }
   0x4   :  { %v57_v5 = vsel %vm29_vm0, %v49_v3, 0.0  ;;  %v60_v8 = vsel %vm29_vm0, %v50_v4, 0.0  ;;  %v30_v10 = vsel %vm29_vm0, %v1485_v7, 0.0  ;;  %v47_v11 = vmul.f32 %v1485_v7, %v1485_v7  ;;  %v111_v16 = vld [vmem:[%s1721_s3 + $0x20] sm:$0xff]  ;;  %v112_v17 = vld [vmem:[%s1721_s3 + $0x28] sm:$0xff]  ;;  %v113_v19 = vld [vmem:[%s1721_s3 + $0x30] sm:$0xff] }
   0x5   :  { %58 = vadd.xlane.f32.xlu1 %v57_v5  ;;  %v33_v12 = vsel %vm29_vm0, %v1491_v9, 0.0  ;;  %v48_v13 = vmul.f32 %v1491_v9, %v1491_v9  ;;  %v1308_v18 = vpack.c.bf16 %v112_v17, %v111_v16  ;;  %v114_v20 = vld [vmem:[%s1721_s3 + $0x38] sm:$0xff]  ;;  %v107_v22 = vld [vmem:[%s1721_s3] sm:$0xff]  ;;  %v108_v23 = vld [vmem:[%s1721_s3 + $0x8] sm:$0xff]  ;;  %s1435_s28 = smov [#allocation2]  }
   0x6   :  { %v51_v14 = vsel %vm29_vm0, %v47_v11, 0.0  ;;  %v1312_v21 = vpack.c.bf16 %v114_v20, %v113_v19  ;;  %v1300_v24 = vpack.c.bf16 %v108_v23, %v107_v22  ;;  %v109_v25 = vld [vmem:[%s1721_s3 + $0x10] sm:$0xff]  ;;  %v110_v26 = vld [vmem:[%s1721_s3 + $0x18] sm:$0xff]  ;;  %v115_v28 = vld [vmem:[%s1721_s3 + $0x40] sm:$0xff]  ;;  %s1101_s29 = sshll.u32 %s1435_s28, 4  ;;  %s1102_s29 = int_to_ptr.vmem [resolvable:$true] %s1101_s29 }
   0x7   :  { %40 = vadd.xlane.f32.xlu0 %v39_v6  ;;  %v54_v15 = vsel %vm29_vm0, %v48_v13, 0.0  ;;  %1309 = vmatprep.subr.bf16.mxu1 %v1308_v18  ;;  %v1304_v27 = vpack.c.bf16 %v110_v26, %v109_v25  ;;  %v116_v29 = vld [vmem:[%s1721_s3 + $0x48] sm:$0xff]  ;;  %v1112_v61 = vld [vmem:[%s1720_s2] ss:$0 sm:$0xff]  ;;  %v1113_v63 = vld [vmem:[%s1720_s2 + $0x1] ss:$0 sm:$0xff]  ;;  %p1415_p1 = scmp.lt.s32.totalorder %s1102_s29, %s1102_s29 }
   0x8   :  { %1311 = vmatpush3.bf16.msra.mxu1 %v1308_v18  ;;  %1301 = vmatprep.subr.bf16.mxu0 %v1300_v24  ;;  %v1533_v30 = vpack.c.bf16 %v116_v29, %v115_v28  ;;  %v118_v17 = vld [vmem:[%s1721_s3 + $0x58] sm:$0xff]  ;;  %vm1325_vm1 = vmpackc.low %vm29_vm0, %vm29_vm0  ;;  %v1120_v25 = vld [vmem:[%s1720_s2 + $0x7] ss:$0 sm:$0xff]  ;;  %s1410_s30 = scalar_lea.vmem %s1102_s29, 256 }
   0x9   :  { %61 = vadd.xlane.f32.xlu1 %v60_v8  ;;  %1313 = vmatprep.subr.bf16.mxu1 %v1312_v21  ;;  %p1411_p0 = scmp.ne.s32.totalorder %s1102_s29, %s1410_s30  ;;  %p1416_p2 = scmp.lt.s32.totalorder %s1410_s30, %s1410_s30 }
   0xa   :  { %1303 = vmatpush3.bf16.msra.mxu0 %v1300_v24 }
   0xb   :  { %31 = vadd.xlane.f32.xlu0 %v30_v10  ;;  %1305 = vmatprep.subr.bf16.mxu0 %v1304_v27  ;;  %p1417_p3 = por %p1416_p2, %p1415_p1 }
   0xc   :  { %1315 = vmatpush3.bf16.msra.mxu1 %v1312_v21 }
   0xd   :  { %34 = vadd.xlane.f32.xlu1 %v33_v12  ;;  %p1418_p4 = pnand %p1417_p3, %p1411_p0 }
   0xe   :  { %1307 = vmatpush3.bf16.msra.mxu0 %v1304_v27  ;;  %v1121_v27 = vld [vmem:[%s1720_s2 + $0x8] ss:$0 sm:$0xff] }
   0xf   :  { %52 = vadd.xlane.f32.xlu0 %v51_v14  ;;  %1317 = vmatprep.subr.bf16.mxu0 %v1533_v30 }
  0x11   :  { %55 = vadd.xlane.f32.xlu1 %v54_v15 }
  0x90   :  { %v38_v31 = vpop.xlane.xlu0 %37 }
  0x91   :  { %v45_v32 = vmul.f32 0.03125, %v38_v31 }
  0x92   :  { %v59_v33 = vpop.xlane.xlu1 %58 }
  0x93   :  { %v69_v34 = vmul.f32 %v45_v32, %v45_v32  ;;  %v65_v35 = vmul.f32 0.03125, %v59_v33  ;;  %v77_v58 = vsub.f32 %v1466_v0, %v45_v32 }
  0x94   :  { %v41_v36 = vpop.xlane.xlu0 %40 }
  0x95   :  { %v73_v37 = vsub.f32 %v65_v35, %v69_v34  ;;  %v46_v38 = vmul.f32 0.03125, %v41_v36  ;;  %v474_v36 = vld [vmem:[%s1719_s1 + $0x8] sm:$0xff] }
  0x96   :  { %v62_v39 = vpop.xlane.xlu1 %61 }
  0x97   :  { %v81_v40 = vadd.f32 1e-05, %v73_v37  ;;  %v70_v41 = vmul.f32 %v46_v38, %v46_v38  ;;  %v66_v42 = vmul.f32 0.03125, %v62_v39  ;;  %v78_v2 = vsub.f32 %v1471_v1, %v46_v38  ;;  %v117_v1 = vld [vmem:[%s1721_s3 + $0x50] sm:$0xff]  ;;  %v473_v37 = vld [vmem:[%s1719_s1] sm:$0xff]  ;;  %v1129_v39 = vld [vmem:[%s1719_s1 + $0x28] sm:$0xff] }
  0x98   :  { %v32_v43 = vpop.xlane.xlu0 %31  ;;  %v1320_v21 = vpack.c.bf16 %v118_v17, %v117_v1 }
  0x99   :  { %1374 = vrsqrt.f32 %v81_v40  ;;  %v74_v44 = vsub.f32 %v66_v42, %v70_v41  ;;  %v43_v45 = vmul.f32 0.03125, %v32_v43  ;;  %v1128_v42 = vld [vmem:[%s1719_s1 + $0x20] sm:$0xff] }
  0x9a   :  { %v35_v46 = vpop.xlane.xlu1 %34 }
  0x9b   :  { %v82_v47 = vadd.f32 1e-05, %v74_v44  ;;  %v67_v48 = vmul.f32 %v43_v45, %v43_v45  ;;  %v44_v49 = vmul.f32 0.03125, %v35_v46  ;;  %v75_v8 = vsub.f32 %v1485_v7, %v43_v45  ;;  %v476_v44 = vld [vmem:[%s1719_s1 + $0x18] sm:$0xff]  ;;  %v475_v46 = vld [vmem:[%s1719_s1 + $0x10] sm:$0xff] }
  0x9c   :  { %v53_v50 = vpop.xlane.xlu0 %52 }
  0x9d   :  { %1376 = vrsqrt.f32 %v82_v47  ;;  %v63_v51 = vmul.f32 0.03125, %v53_v50  ;;  %v68_v53 = vmul.f32 %v44_v49, %v44_v49  ;;  %v76_v12 = vsub.f32 %v1491_v9, %v44_v49  ;;  %v1131_v49 = vld [vmem:[%s1719_s1 + $0x38] sm:$0xff] }
  0x9e   :  { %v56_v52 = vpop.xlane.xlu1 %55 }
  0x9f   :  { %v71_v54 = vsub.f32 %v63_v51, %v67_v48  ;;  %v64_v55 = vmul.f32 0.03125, %v56_v52  ;;  %v1130_v52 = vld [vmem:[%s1719_s1 + $0x30] sm:$0xff] }
  0xa1   :  { %v79_v56 = vadd.f32 1e-05, %v71_v54  ;;  %v72_v57 = vsub.f32 %v64_v55, %v68_v53 }
  0xa3   :  { %v1375_v59 = vpop.eup %1374  ;;  %1378 = vrsqrt.f32 %v79_v56  ;;  %v80_v60 = vadd.f32 1e-05, %v72_v57 }
  0xa4   :  { %v89_v62 = vmul.f32 %v1375_v59, %v77_v58 }
  0xa5   :  { %1380 = vrsqrt.f32 %v80_v60 }
  0xa6   :  { %v97_v3 = vmul.f32 %v1112_v61, %v89_v62 }
  0xa7   :  { %v1377_v4 = vpop.eup %1376 }
  0xa8   :  { %v105_v5 = vadd.f32 %v1113_v63, %v97_v3  ;;  %v90_v6 = vmul.f32 %v1377_v4, %v78_v2 }
  0xaa   :  { %1222 = vmatprep.mubr.msk.f32.mxu1 %vm29_vm0, %v105_v5  ;;  %v98_v0 = vmul.f32 %v1112_v61, %v90_v6 }
  0xac   :  { %v106_v10 = vadd.f32 %v1113_v63, %v98_v0 }
  0xad   :  { %v1379_v11 = vpop.eup %1378 }
  0xae   :  { %1223 = vmatmul.mubr.msk.f32.vlgmr.msra.gmra.mrb[0].mxu1 %vm29_vm0, %v106_v10  ;;  %v87_v13 = vmul.f32 %v1379_v11, %v75_v8 }
  0xaf   :  { %v1381_v14 = vpop.eup %1380 }
  0xb0   :  { %v95_v15 = vmul.f32 %v1112_v61, %v87_v13  ;;  %v88_v16 = vmul.f32 %v1381_v14, %v76_v12 }
  0xb2   :  { %v103_v18 = vadd.f32 %v1113_v63, %v95_v15  ;;  %v96_v19 = vmul.f32 %v1112_v61, %v88_v16 }
  0xb4   :  { %1211 = vmatprep.mubr.msk.f32.mxu0 %vm29_vm0, %v103_v18  ;;  %v104_v20 = vadd.f32 %v1113_v63, %v96_v19  ;;  %v646_v18 = vld [vmem:[%s1721_s3 + $0x60] sm:$0xff]  ;;  %v647_v19 = vld [vmem:[%s1721_s3 + $0x68] sm:$0xff] }
  0xb6   :  { %1212 = vmatmul.mubr.msk.f32.vlgmr.msra.gmra.mrb[0].mxu0 %vm29_vm0, %v104_v20  ;;  %v648_v20 = vld [vmem:[%s1721_s3 + $0x70] sm:$0xff] }
  0xb7   :  { %1319 = vmatpush3.bf16.msra.mxu0 %v1533_v30  ;;  %1233 = vmatprep.mubr.msk.f32.mxu0 %vm29_vm0, %v105_v5 }
  0xb8   :  { %1321 = vmatprep.subr.bf16.mxu0 %v1320_v21 }
  0xbb   :  { %1323 = vmatpush3.bf16.msra.mxu0 %v1320_v21  ;;  %v1334_v21 = vpack.c.bf16 %v647_v19, %v646_v18 }
  0xbe   :  { %1234 = vmatmul.mubr.msk.f32.vlgmr.msra.gmra.mrb[2].mxu0 %vm29_vm0, %v106_v10 }
 0x181   :  { %v1224_v22 = vpop.f32.mrb[0].mxu1 }
 0x182   :  { %v272_v23 = vpop.f32.mrb[1].mxu1 }
 0x183   :  { %v1324_v24 = vpack.c.bf16 %v1224_v22, %v272_v23  ;;  %v649_v22 = vld [vmem:[%s1721_s3 + $0x78] sm:$0xff] }
 0x184   :  { %v1338_v23 = vpack.c.bf16 %v649_v22, %v648_v20  ;;  %v1141_v22 = vld [vmem:[%s1720_s2 + $0x2] ss:$0 sm:$0xff] }
 0x185   :  { %1326 = vmatprep.subr.msk.bf16.mxu1 %vm1325_vm1, %v1324_v24 }
 0x186   :  { %1329 = vmatpush3.bf16.xpose.msk.msra.mxu1 %vm1325_vm1, %v1324_v24 }
 0x187   :  { %1335 = vmatprep.subr.bf16.mxu1 %v1334_v21 }
 0x189   :  { %v1213_v26 = vpop.f32.mrb[0].mxu0 }
 0x18a   :  { %v191_v28 = vpop.f32.mrb[1].mxu0  ;;  %v362_v30 = vmul.f32 %v1213_v26, %v1120_v25  ;;  %v369_v32 = vmul.f32 %v1213_v26, %v1121_v27 }
 0x18b   :  { %v361_v29 = vmul.f32 %v1120_v25, %v191_v28  ;;  %v368_v31 = vmul.f32 %v1121_v27, %v191_v28 }
 0x18d   :  { %1240 = vmatprep.mubr.msk.f32.mxu1 %vm29_vm0, %v361_v29 }
 0x18e   :  { %1241 = vmatmul.mubr.msk.f32.vlgmr.msra.gmra.mrb[2].mxu1 %vm29_vm0, %v362_v30 }
 0x18f   :  { %1243 = vmatprep.mubr.msk.f32.mxu1 %vm29_vm0, %v368_v31  ;;  %1337 = vmatpush3.bf16.msra.mxu1 %v1334_v21 }
 0x190   :  { %1339 = vmatprep.subr.bf16.mxu1 %v1338_v23 }
 0x191   :  { %v1235_v33 = vpop.f32.mrb[2].mxu0 }
 0x192   :  { %v347_v34 = vpop.f32.mrb[3].mxu0  ;;  %1244 = vmatmul.mubr.msk.f32.gmra.mrb[4].mxu1 %vm29_vm0, %v369_v32 }
 0x193   :  { %v1330_v35 = vpack.c.bf16 %v1235_v33, %v347_v34  ;;  %1341 = vmatpush3.bf16.msra.mxu1 %v1338_v23 }
 0x195   :  { %1331 = vmatprep.subr.bf16.mxu0 %v1330_v35 }
 0x196   :  { %1333 = vmatpush3.bf16.msra.mxu0 %v1330_v35 }
 0x261   :  { %v1242_v38 = vpop.f32.mrb[2].mxu1 }
 0x262   :  { %v478_v40 = vmul.f32 %v1242_v38, %v474_v36  ;;  %v454_v41 = vpop.f32.mrb[3].mxu1 }
 0x263   :  { %v477_v43 = vmul.f32 %v473_v37, %v454_v41  ;;  %v734_v41 = vld [vmem:[%s1721_s3 + $0x88] sm:$0xff] }
 0x264   :  { %v1586_v45 = vadd.f32 %v1129_v39, %v478_v40  ;;  %v733_v40 = vld [vmem:[%s1721_s3 + $0x80] sm:$0xff] }
 0x265   :  { %v1591_v47 = vadd.f32 %v1128_v42, %v477_v43  ;;  %v1245_v48 = vpop.f32.mrb[4].mxu1  ;;  %v1342_v42 = vpack.c.bf16 %v734_v41, %v733_v40  ;;  %v735_v43 = vld [vmem:[%s1721_s3 + $0x90] sm:$0xff] }
 0x266   :  { %v480_v50 = vmul.f32 %v1245_v48, %v476_v44  ;;  %v464_v51 = vpop.f32.mrb[5].mxu1  ;;  %v494_v53 = vsel %vm490_vm2, %v1586_v45, -inf  ;;  %vm536_vm4 = vcmp.ne.f32.partialorder %v1586_v45, 0.0  ;;  %v736_v44 = vld [vmem:[%s1721_s3 + $0x98] sm:$0xff] }
 0x267   :  { %v479_v54 = vmul.f32 %v475_v46, %v464_v51  ;;  %495 = vmax.xlane.f32.xlu1 %v494_v53  ;;  %v491_v55 = vsel %vm490_vm2, %v1591_v47, -inf  ;;  %vm535_vm3 = vcmp.ne.f32.partialorder %v1591_v47, 0.0  ;;  %1343 = vmatprep.subr.bf16.mxu1 %v1342_v42 }
 0x268   :  { %v1603_v56 = vadd.f32 %v1131_v49, %v480_v50  ;;  %492 = vmax.xlane.f32.xlu0 %v491_v55  ;;  %v1136_v50 = vld [vmem:[%s1720_s2 + $0x4] ss:$0 sm:$0xff] }
 0x269   :  { %v1605_v57 = vadd.f32 %v1130_v52, %v479_v54  ;;  %v645_v51 = vadd.f32 %v1136_v50, %v1491_v9  ;;  %v644_v52 = vadd.f32 %v1136_v50, %v1485_v7  ;;  %v820_v7 = vld [vmem:[%s1721_s3 + $0xa0] sm:$0xff]  ;;  %v821_v9 = vld [vmem:[%s1721_s3 + $0xa8] sm:$0xff] }
 0x26a   :  { %v500_v58 = vsel %vm490_vm2, %v1603_v56, -inf  ;;  %vm538_vm6 = vcmp.ne.f32.partialorder %v1603_v56, 0.0 }
 0x26b   :  { %501 = vmax.xlane.f32.xlu1 %v500_v58  ;;  %v497_v59 = vsel %vm490_vm2, %v1605_v57, -inf  ;;  %vm537_vm5 = vcmp.ne.f32.partialorder %v1605_v57, 0.0 }
 0x26c   :  { %498 = vmax.xlane.f32.xlu0 %v497_v59 }
 0x2f4   :  { %v496_v60 = vpop.xlane.xlu1 %495 }
 0x2f5   :  { %v504_v61 = vsub.f32 %v1586_v45, %v496_v60  ;;  %v493_v62 = vpop.xlane.xlu0 %492 }
 0x2f6   :  { %v503_v63 = vsub.f32 %v1591_v47, %v493_v62  ;;  %v1346_v47 = vpack.c.bf16 %v736_v44, %v735_v43 }
 0x2f7   :  { %v509_v2 = vmul.f32 1.442695, %v504_v61 }
 0x2f8   :  { %v507_v3 = vmul.f32 1.442695, %v503_v63  ;;  %v502_v4 = vpop.xlane.xlu1 %501  ;;  %v822_v63 = vld [vmem:[%s1721_s3 + $0xb0] sm:$0xff] }
 0x2f9   :  { %1382 = vpow2.f32 %v509_v2  ;;  %v506_v5 = vsub.f32 %v1603_v56, %v502_v4  ;;  %v499_v6 = vpop.xlane.xlu0 %498  ;;  %v1350_v2 = vpack.c.bf16 %v821_v9, %v820_v7 }
 0x2fa   :  { %1384 = vpow2.f32 %v507_v3  ;;  %v505_v0 = vsub.f32 %v1605_v57, %v499_v6  ;;  %v823_v3 = vld [vmem:[%s1721_s3 + $0xb8] sm:$0xff] }
 0x2fb   :  { %v513_v8 = vmul.f32 1.442695, %v506_v5  ;;  %v1354_v4 = vpack.c.bf16 %v823_v3, %v822_v63  ;;  %1351 = vmatprep.subr.bf16.mxu0 %v1350_v2 }
 0x2fc   :  { %v511_v10 = vmul.f32 1.442695, %v505_v0 }
 0x2fd   :  { %1386 = vpow2.f32 %v513_v8 }
 0x2fe   :  { %1388 = vpow2.f32 %v511_v10 }
 0x303   :  { %v1383_v11 = vpop.eup %1382 }
 0x304   :  { %v1385_v12 = vpop.eup %1384  ;;  %v518_v13 = vsel %vm490_vm2, %v1383_v11, 0.0 }
 0x305   :  { %519 = vadd.xlane.f32.xlu1 %v518_v13  ;;  %v515_v14 = vsel %vm490_vm2, %v1385_v12, 0.0 }
 0x306   :  { %516 = vadd.xlane.f32.xlu0 %v515_v14 }
 0x307   :  { %v1387_v15 = vpop.eup %1386 }
 0x308   :  { %v1389_v16 = vpop.eup %1388  ;;  %v524_v1 = vsel %vm490_vm2, %v1387_v15, 0.0 }
 0x309   :  { %525 = vadd.xlane.f32.xlu1 %v524_v1  ;;  %v521_v17 = vsel %vm490_vm2, %v1389_v16, 0.0 }
 0x30a   :  { %522 = vadd.xlane.f32.xlu0 %v521_v17 }
 0x392   :  { %v520_v24 = vpop.xlane.xlu1 %519 }
 0x393   :  { %1390 = vrcp.f32 %v520_v24  ;;  %v517_v25 = vpop.xlane.xlu0 %516 }
 0x394   :  { %1392 = vrcp.f32 %v517_v25 }
 0x396   :  { %v526_v26 = vpop.xlane.xlu1 %525 }
 0x397   :  { %1394 = vrcp.f32 %v526_v26  ;;  %v523_v27 = vpop.xlane.xlu0 %522  ;;  %v1142_v26 = vld [vmem:[%s1720_s2 + $0x3] ss:$0 sm:$0xff] }
 0x398   :  { %1396 = vrcp.f32 %v523_v27 }
 0x39d   :  { %v1391_v28 = vpop.eup %1390 }
 0x39e   :  { %v1393_v29 = vpop.eup %1392  ;;  %v532_v30 = vmul.f32 %v1391_v28, %v1383_v11 }
 0x39f   :  { %v531_v31 = vmul.f32 %v1393_v29, %v1385_v12 }
 0x3a0   :  { %v540_v35 = vsel %vm536_vm4, %v532_v30, 0.0 }
 0x3a1   :  { %v1395_v32 = vpop.eup %1394  ;;  %v539_v33 = vsel %vm535_vm3, %v531_v31, 0.0  ;;  %v824_v31 = vld [vmem:[%s1721_s3 + $0xc0] sm:$0xff] }
 0x3a2   :  { %v1397_v34 = vpop.eup %1396  ;;  %1250 = vmatprep.mubr.msk.f32.mxu0 %vm490_vm2, %v539_v33  ;;  %v534_v36 = vmul.f32 %v1395_v32, %v1387_v15  ;;  %v825_v32 = vld [vmem:[%s1721_s3 + $0xc8] sm:$0xff] }
 0x3a3   :  { %1251 = vmatmul.mubr.msk.f32.vlgmr.msra.gmra.mrb[4].mxu0 %vm490_vm2, %v540_v35  ;;  %v533_v37 = vmul.f32 %v1397_v34, %v1389_v16  ;;  %v1358_v33 = vpack.c.bf16 %v825_v32, %v824_v31  ;;  %v826_v34 = vld [vmem:[%s1721_s3 + $0xd0] sm:$0xff]  ;;  %v827_v35 = vld [vmem:[%s1721_s3 + $0xd8] sm:$0xff] }
 0x3a4   :  { %v542_v39 = vsel %vm538_vm6, %v534_v36, 0.0  ;;  %1353 = vmatpush3.bf16.msra.mxu0 %v1350_v2  ;;  %v1362_v36 = vpack.c.bf16 %v827_v35, %v826_v34 }
 0x3a5   :  { %v541_v38 = vsel %vm537_vm5, %v533_v37, 0.0  ;;  %1355 = vmatprep.subr.bf16.mxu0 %v1354_v4  ;;  %v1143_v37 = vld [vmem:[%s1720_s2 + $0x5] ss:$0 sm:$0xff] }
 0x3a6   :  { %1253 = vmatprep.mubr.msk.f32.mxu0 %vm490_vm2, %v541_v38 }
 0x3a7   :  { %1254 = vmatmul.mubr.msk.f32.gmra.mrb[6].mxu0 %vm490_vm2, %v542_v39 }
 0x3a8   :  { %1357 = vmatpush3.bf16.msra.mxu0 %v1354_v4 }
 0x3a9   :  { %1359 = vmatprep.subr.bf16.mxu0 %v1358_v33 }
 0x476   :  { %v1252_v45 = vpop.f32.mrb[4].mxu0 }
 0x477   :  { %v621_v46 = vpop.f32.mrb[5].mxu0 }
 0x478   :  { %1264 = vmatprep.mubr.msk.f32.mxu1 %vm29_vm0, %v621_v46 }
 0x479   :  { %1265 = vmatmul.mubr.msk.f32.vlgmr.msra.gmra.mrb[6].mxu1 %vm29_vm0, %v1252_v45 }
 0x47a   :  { %1345 = vmatpush3.bf16.msra.mxu1 %v1342_v42  ;;  %v1255_v48 = vpop.f32.mrb[6].mxu0 }
 0x47b   :  { %v631_v49 = vpop.f32.mrb[7].mxu0  ;;  %1347 = vmatprep.subr.bf16.mxu1 %v1346_v47 }
 0x47c   :  { %1275 = vmatprep.mubr.msk.f32.mxu1 %vm29_vm0, %v631_v49 }
 0x47e   :  { %1349 = vmatpush3.bf16.msra.mxu1 %v1346_v47 }
 0x481   :  { %1276 = vmatmul.mubr.msk.f32.vlgmr.msra.gmra.mrb[6].mxu1 %vm29_vm0, %v1255_v48 }
 0x554   :  { %v1277_v53 = vpop.f32.mrb[6].mxu1 }
 0x555   :  { %v1366_v54 = vadd.f32 %v1277_v53, %v645_v51  ;;  %v809_v55 = vpop.f32.mrb[7].mxu1 }
 0x556   :  { %v1367_v56 = vadd.f32 %v809_v55, %v644_v52 }
 0x557   :  { %v831_v57 = vsel %vm29_vm0, %v1366_v54, 0.0  ;;  %v837_v58 = vmul.f32 %v1366_v54, %v1366_v54 }
 0x558   :  { %832 = vadd.xlane.f32.xlu1 %v831_v57  ;;  %v828_v59 = vsel %vm29_vm0, %v1367_v56, 0.0  ;;  %v836_v60 = vmul.f32 %v1367_v56, %v1367_v56 }
 0x559   :  { %829 = vadd.xlane.f32.xlu0 %v828_v59  ;;  %v841_v61 = vsel %vm29_vm0, %v837_v58, 0.0 }
 0x55a   :  { %v838_v62 = vsel %vm29_vm0, %v836_v60, 0.0 }
 0x55c   :  { %842 = vadd.xlane.f32.xlu1 %v841_v61 }
 0x55d   :  { %839 = vadd.xlane.f32.xlu0 %v838_v62 }
 0x5e5   :  { %v833_v5 = vpop.xlane.xlu1 %832 }
 0x5e6   :  { %v835_v6 = vmul.f32 0.03125, %v833_v5  ;;  %v830_v0 = vpop.xlane.xlu0 %829 }
 0x5e7   :  { %v834_v8 = vmul.f32 0.03125, %v830_v0 }
 0x5e8   :  { %v847_v11 = vmul.f32 %v835_v6, %v835_v6  ;;  %v851_v19 = vsub.f32 %v1366_v54, %v835_v6 }
 0x5e9   :  { %v843_v10 = vpop.xlane.xlu1 %842  ;;  %v846_v14 = vmul.f32 %v834_v8, %v834_v8  ;;  %v850_v21 = vsub.f32 %v1367_v56, %v834_v8 }
 0x5ea   :  { %v845_v12 = vmul.f32 0.03125, %v843_v10  ;;  %v840_v13 = vpop.xlane.xlu0 %839 }
 0x5eb   :  { %v844_v15 = vmul.f32 0.03125, %v840_v13 }
 0x5ec   :  { %v849_v16 = vsub.f32 %v845_v12, %v847_v11 }
 0x5ed   :  { %v848_v1 = vsub.f32 %v844_v15, %v846_v14 }
 0x5ee   :  { %v853_v17 = vadd.f32 1e-05, %v849_v16 }
 0x5ef   :  { %v852_v18 = vadd.f32 1e-05, %v848_v1 }
 0x5f0   :  { %1398 = vrsqrt.f32 %v853_v17  ;;  %v1434_v17 = vmov -1.0  }
 0x5f1   :  { %1400 = vrsqrt.f32 %v852_v18 }
 0x5fa   :  { %v1399_v20 = vpop.eup %1398 }
 0x5fb   :  { %v1401_v23 = vpop.eup %1400  ;;  %v857_v24 = vmul.f32 %v1399_v20, %v851_v19 }
 0x5fc   :  { %v856_v25 = vmul.f32 %v1401_v23, %v850_v21 }
 0x5fd   :  { %v863_v27 = vmul.f32 %v1141_v22, %v857_v24 }
 0x5fe   :  { %v862_v28 = vmul.f32 %v1141_v22, %v856_v25 }
 0x5ff   :  { %v869_v30 = vadd.f32 %v1142_v26, %v863_v27 }
 0x600   :  { %v868_v29 = vadd.f32 %v1142_v26, %v862_v28 }
 0x602   :  { %1286 = vmatprep.mubr.msk.f32.mxu0 %vm29_vm0, %v868_v29  ;;  %v1146_v29 = vld [vmem:[%s1720_s2 + $0x6] ss:$0 sm:$0xff] }
 0x603   :  { %1287 = vmatmul.mubr.msk.f32.vlgmr.msra.gmra.mrb[8].mxu0 %vm29_vm0, %v869_v30 }
 0x604   :  { %1361 = vmatpush3.bf16.msra.mxu0 %v1358_v33 }
 0x605   :  { %1363 = vmatprep.subr.bf16.mxu0 %v1362_v36 }
 0x608   :  { %1365 = vmatpush3.bf16.msra.mxu0 %v1362_v36 }
 0x6d6   :  { %v1288_v38 = vpop.f32.mrb[8].mxu0 }
 0x6d7   :  { %v952_v39 = vadd.f32 %v1288_v38, %v1143_v37  ;;  %v946_v40 = vpop.f32.mrb[9].mxu0 }
 0x6d8   :  { %v947_v41 = vadd.f32 %v1143_v37, %v946_v40 }
 0x6d9   :  { %v958_v42 = vmul.f32 0.70710677, %v952_v39  ;;  %v956_v26 = vmul.f32 0.5, %v952_v39 }
 0x6da   :  { %v957_v43 = vmul.f32 0.70710677, %v947_v41  ;;  %v955_v24 = vmul.f32 0.5, %v947_v41 }
 0x6db   :  { %v964_v44 = vand.u32 2147483647, %v958_v42  ;;  %vm960_vm7 = vcmp.ge.f32.partialorder %v958_v42, 0.0 }
 0x6dc   :  { %v963_v45 = vand.u32 2147483647, %v957_v43  ;;  %vm959_vm8 = vcmp.ge.f32.partialorder %v957_v43, 0.0  ;;  %v962_v18 = vsel %vm960_vm7, 1.0, %v1434_v17 }
 0x6dd   :  { %v966_v46 = vmul.f32 0.3275911, %v964_v44  ;;  %v992_v50 = vsub.f32 0.0, %v964_v44  ;;  %v961_v21 = vsel %vm959_vm8, 1.0, %v1434_v17 }
 0x6de   :  { %v965_v47 = vmul.f32 0.3275911, %v963_v45  ;;  %v991_v51 = vsub.f32 0.0, %v963_v45 }
 0x6df   :  { %v968_v48 = vadd.f32 1.0, %v966_v46  ;;  %v994_v53 = vmul.f32 %v992_v50, %v964_v44 }
 0x6e0   :  { %v967_v49 = vadd.f32 1.0, %v965_v47  ;;  %v993_v56 = vmul.f32 %v991_v51, %v963_v45 }
 0x6e1   :  { %1402 = vrcp.f32 %v968_v48  ;;  %v997_v59 = vmul.f32 1.442695, %v994_v53 }
 0x6e2   :  { %1404 = vrcp.f32 %v967_v49  ;;  %v995_v62 = vmul.f32 1.442695, %v993_v56 }
 0x6e3   :  { %1406 = vpow2.f32 %v997_v59 }
 0x6e4   :  { %1408 = vpow2.f32 %v995_v62 }
 0x6eb   :  { %v1403_v52 = vpop.eup %1402 }
 0x6ec   :  { %v1405_v54 = vpop.eup %1404  ;;  %v974_v55 = vmul.f32 1.0614054, %v1403_v52 }
 0x6ed   :  { %v973_v57 = vmul.f32 1.0614054, %v1405_v54  ;;  %v1407_v12 = vpop.eup %1406 }
 0x6ee   :  { %v976_v58 = vadd.f32 -1.4531521, %v974_v55  ;;  %v1409_v14 = vpop.eup %1408 }
 0x6ef   :  { %v975_v60 = vadd.f32 -1.4531521, %v973_v57 }
 0x6f0   :  { %v978_v61 = vmul.f32 %v1403_v52, %v976_v58 }
 0x6f1   :  { %v977_v7 = vmul.f32 %v1405_v54, %v975_v60 }
 0x6f2   :  { %v980_v9 = vadd.f32 1.4214138, %v978_v61 }
 0x6f3   :  { %v979_v63 = vadd.f32 1.4214138, %v977_v7 }
 0x6f4   :  { %v982_v2 = vmul.f32 %v1403_v52, %v980_v9 }
 0x6f5   :  { %v981_v3 = vmul.f32 %v1405_v54, %v979_v63 }
 0x6f6   :  { %v984_v4 = vadd.f32 -0.28449672, %v982_v2 }
 0x6f7   :  { %v983_v5 = vadd.f32 -0.28449672, %v981_v3 }
 0x6f8   :  { %v986_v6 = vmul.f32 %v1403_v52, %v984_v4 }
 0x6f9   :  { %v985_v0 = vmul.f32 %v1405_v54, %v983_v5 }
 0x6fa   :  { %v988_v8 = vadd.f32 0.2548296, %v986_v6 }
 0x6fb   :  { %v987_v10 = vadd.f32 0.2548296, %v985_v0 }
 0x6fc   :  { %v990_v11 = vmul.f32 %v1403_v52, %v988_v8 }
 0x6fd   :  { %v989_v13 = vmul.f32 %v1405_v54, %v987_v10 }
 0x6fe   :  { %v1000_v15 = vmul.f32 %v1407_v12, %v990_v11 }
 0x6ff   :  { %v999_v16 = vmul.f32 %v1409_v14, %v989_v13 }
 0x700   :  { %v1002_v1 = vsub.f32 1.0, %v1000_v15 }
 0x701   :  { %v1001_v19 = vsub.f32 1.0, %v999_v16 }
 0x702   :  { %v1004_v20 = vmul.f32 %v1002_v1, %v962_v18 }
 0x703   :  { %v1003_v22 = vmul.f32 %v1001_v19, %v961_v21 }
 0x704   :  { %v1006_v23 = vadd.f32 1.0, %v1004_v20 }
 0x705   :  { %v1005_v25 = vadd.f32 1.0, %v1003_v22 }
 0x706   :  { %v1008_v28 = vmul.f32 %v1006_v23, %v956_v26 }
 0x707   :  { %v1007_v27 = vmul.f32 %v1005_v25, %v955_v24 }
 0x709   :  { %1297 = vmatprep.mubr.msk.f32.mxu0 %vm29_vm0, %v1007_v27 }
 0x70a   :  { %1298 = vmatmul.mubr.msk.f32.vlgmr.msra.gmra.mrb[10].mxu0 %vm29_vm0, %v1008_v28 }
 0x7dd   :  { %v1299_v30 = vpop.f32.mrb[10].mxu0 }
 0x7de   :  { %v1091_v31 = vadd.f32 %v1299_v30, %v1146_v29  ;;  %v1085_v32 = vpop.f32.mrb[11].mxu0 }
 0x7df   :  { %v1086_v33 = vadd.f32 %v1146_v29, %v1085_v32 }
 0x7e0   :  { %1095 = vst.msk [vmem:[#allocation2 + $0x8] sm:$0xff] %vm29_vm0, %v1091_v31 }
 0x7e1   :  { %1094 = vst.msk [vmem:[#allocation2] sm:$0xff] %vm29_vm0, %v1086_v33 }
 0x7e2   :  { %1421 = shalt.err (!%p1418_p4)
}
 0x7e3   :  { %s1422_s6 = scalar_lea.hbm %s1722_s4, 256 }
 0x7e4   :  { %p1423_p5 = scmp.ne.s32.totalorder %s1722_s4, %s1422_s6  ;;  %p1426_p6 = scmp.lt.u32.totalorder %s1422_s6, %s1722_s4 }
 0x7e6   :  { %p1428_p7 = pnand %p1426_p6, %p1423_p5 }
 0x7e8   :  { %1431 = shalt.err (!%p1428_p7)
}
 0x7e9   :  { %s1436_s11 = smov 128   ;;  %s1437_s12 = smov 8  }
 0x7ea   :  { %1107 = dma.vmem_to_hbm [thread:$0]  %s1102_s29, 256, %s1722_s4, [#allocation3], %s1436_s11, %s1436_s11, %s1437_s12  }
 0x7eb   :  { %1432 = dma.done.wait [#allocation3], 256  }
 0x7ec   :  { %1433 = vsyncadd [#allocation3], 4294967040 }
 0x7ed   :  { %1111 = vsyncpa [#allocation3], 1 }

</bundles_post_ra>
